<compile_context>
chip_gen: v6e
topology: v6e:2x2x1
jax: 0.10.0
libtpu: 0.0.40
codegen_flags: <defaults>
</compile_context>

<pallas_src>
import jax
import jax.numpy as jnp
from jax import lax
from jax.experimental import pallas as pl
from jax.experimental.pallas import tpu as pltpu


def _round_up(x, m):
    return ((x + m - 1) // m) * m


def prepare_glove_params(wi, wj, bi, bj, table_dtype=jnp.float32):
    """One-time parameter preparation (NOT in the per-call forward path).

    Returns augmented, lane-padded tables:
      WI' = [WI | bi | 1 | 0..], WJ' = [WJ | 1 | bj | 0..], shape (N, D_pad)
    so that WI'[i] . WJ'[j] = sum(WI[i]*WJ[j]) + bi[i] + bj[j].
    """
    n, d = wi.shape
    d_pad = max(128, _round_up(d + 2, 128))

    def aug(w, b, bias_col, ones_col):
        a = jnp.zeros((n, d_pad), jnp.float32)
        a = a.at[:, :d].set(w.astype(jnp.float32))
        a = a.at[:, bias_col].set(b.reshape(n).astype(jnp.float32))
        a = a.at[:, ones_col].set(1.0)
        return a.astype(table_dtype)

    wi_aug = aug(wi, bi, bias_col=d, ones_col=d + 1)
    wj_aug = aug(wj, bj, bias_col=d + 1, ones_col=d)
    return wi_aug, wj_aug


def glove_forward(i_indices, j_indices, wi_aug, wj_aug, *, batch_tile=128):
    """GloVe score for each (i, j) pair. Returns (B,) float32.

    wi_aug / wj_aug must come from prepare_glove_params (done once).
    """
    b = i_indices.shape[0]
    n, d_pad = wi_aug.shape
    itemsize = jnp.dtype(wi_aug.dtype).itemsize

    # Batch tiling: TB pairs per grid step.
    tb = min(batch_tile, _round_up(b, 8))
    num_tiles = pl.cdiv(b, tb)
    # Outer axis >= 2 whenever possible so v7x megacore shards batch tiles.
    outer = 2 if num_tiles >= 2 else 1
    inner_tiles = pl.cdiv(num_tiles, outer)
    total_tiles = outer * inner_tiles
    bp = total_tiles * tb

    i2 = jnp.pad(i_indices.astype(jnp.int32), (0, bp - b))
    j2 = jnp.pad(j_indices.astype(jnp.int32), (0, bp - b))

    def kernel(ii_ref, jj_ref, wi_hbm, wj_hbm, o_ref, wi_buf, wj_buf, sems):
        o = pl.program_id(0)
        i = pl.program_id(1)
        slot = i % 2

        def issue_tile(tile_idx, dst_slot):
            # Clamp keeps traced-but-never-executed prefetch branches in bounds.
            tile_idx = jnp.minimum(tile_idx, total_tiles - 1)
            base = tile_idx * tb

            def body(r, carry):
                ri = ii_ref[base + r]
                rj = jj_ref[base + r]
                pltpu.make_async_copy(
                    wi_hbm.at[pl.ds(ri, 1)],
                    wi_buf.at[dst_slot, pl.ds(r, 1)],
                    sems.at[0, dst_slot]).start()
                pltpu.make_async_copy(
                    wj_hbm.at[pl.ds(rj, 1)],
                    wj_buf.at[dst_slot, pl.ds(r, 1)],
                    sems.at[1, dst_slot]).start()
                return carry

            lax.fori_loop(0, tb, body, 0)

        def wait_tile(dst_slot):
            def body(r, carry):
                pltpu.make_async_copy(
                    wi_hbm.at[pl.ds(0, 1)],
                    wi_buf.at[dst_slot, pl.ds(r, 1)],
                    sems.at[0, dst_slot]).wait()
                pltpu.make_async_copy(
                    wj_hbm.at[pl.ds(0, 1)],
                    wj_buf.at[dst_slot, pl.ds(r, 1)],
                    sems.at[1, dst_slot]).wait()
                return carry

            lax.fori_loop(0, tb, body, 0)

        # Prologue: first inner step of each outer slice gathers its own tile.
        @pl.when(i == 0)
        def _():
            issue_tile(o * inner_tiles + i, slot)

        # Prefetch the next tile of this outer slice into the other buffer.
        @pl.when(i + 1 < inner_tiles)
        def _():
            issue_tile(o * inner_tiles + i + 1, 1 - slot)

        wait_tile(slot)

        # Biases are already folded into the gathered rows; padding cols are 0.
        wi_rows = wi_buf[slot].astype(jnp.float32)        # (TB, D_pad)
        wj_rows = wj_buf[slot].astype(jnp.float32)        # (TB, D_pad)
        o_ref[...] = jnp.sum(wi_rows * wj_rows, axis=1, keepdims=True)

    out = pl.pallas_call(
        kernel,
        out_shape=jax.ShapeDtypeStruct((bp, 1), jnp.float32),
        grid_spec=pltpu.PrefetchScalarGridSpec(
            num_scalar_prefetch=2,               # i_idx, j_idx -> SMEM
            grid=(outer, inner_tiles),
            in_specs=[
                pl.BlockSpec(memory_space=pl.ANY),   # WI' stays in HBM
                pl.BlockSpec(memory_space=pl.ANY),   # WJ' stays in HBM
            ],
            out_specs=pl.BlockSpec(
                (tb, 1), lambda o, i, ii, jj: (o * inner_tiles + i, 0)),
            scratch_shapes=[
                pltpu.VMEM((2, tb, d_pad), wi_aug.dtype),   # double-buffered
                pltpu.VMEM((2, tb, d_pad), wj_aug.dtype),
                pltpu.SemaphoreType.DMA((2, 2)),            # [table, slot]
            ],
        ),
        compiler_params=pltpu.CompilerParams(
            dimension_semantics=("parallel", "arbitrary")),
        cost_estimate=pl.CostEstimate(
            flops=2 * bp * d_pad,
            transcendentals=0,
            bytes_accessed=2 * bp * d_pad * itemsize + bp * 4 + 2 * bp * 4),
    )(i2, j2, wi_aug, wj_aug)

    return out.reshape(bp)[:b]


def glove_reference(i_indices, j_indices, wi, wj, bi, bj):
    w_i = wi[i_indices]
    w_j = wj[j_indices]
    b_i = bi[i_indices, 0]
    b_j = bj[j_indices, 0]
    return jnp.sum(w_i * w_j, axis=1) + b_i + b_j


if __name__ == "__main__":
    key = jax.random.PRNGKey(0)

    # --- Test 1: module-sized example (matches GloveModel.__init__ init) ---
    num_embeddings, embedding_dim, batch = 64, 32, 8
    k_wi, k_wj, k_i, k_j, k2 = jax.random.split(key, 5)

    wi = jax.random.uniform(k_wi, (num_embeddings, embedding_dim),
                            jnp.float32, minval=-1.0, maxval=1.0)
    wj = jax.random.uniform(k_wj, (num_embeddings, embedding_dim),
                            jnp.float32, minval=-1.0, maxval=1.0)
    bi = jnp.zeros((num_embeddings, 1), jnp.float32)
    bj = jnp.zeros((num_embeddings, 1), jnp.float32)

    i_idx = jax.random.randint(k_i, (batch,), 0, num_embeddings, jnp.int32)
    j_idx = jax.random.randint(k_j, (batch,), 0, num_embeddings, jnp.int32)

    wi_aug, wj_aug = prepare_glove_params(wi, wj, bi, bj)   # once, not per call
    out = jax.block_until_ready(glove_forward(i_idx, j_idx, wi_aug, wj_aug))
    ref = glove_reference(i_idx, j_idx, wi, wj, bi, bj)
    assert out.shape == (batch,), out.shape
    assert jnp.allclose(out, ref, atol=1e-5, rtol=1e-5), (out, ref)

    # --- Test 2: multi-tile path (double buffering, parallel outer axis,
    #             non-zero biases, padded batch tail) ---
    n2, d2, b2 = 200, 32, 300
    k_wi2, k_wj2, k_bi2, k_bj2, k_i2, k_j2 = jax.random.split(k2, 6)
    wi2 = jax.random.uniform(k_wi2, (n2, d2), jnp.float32, minval=-1.0, maxval=1.0)
    wj2 = jax.random.uniform(k_wj2, (n2, d2), jnp.float32, minval=-1.0, maxval=1.0)
    bi2 = 0.1 * jax.random.normal(k_bi2, (n2, 1), jnp.float32)
    bj2 = 0.1 * jax.random.normal(k_bj2, (n2, 1), jnp.float32)
    i_idx2 = jax.random.randint(k_i2, (b2,), 0, n2, jnp.int32)
    j_idx2 = jax.random.randint(k_j2, (b2,), 0, n2, jnp.int32)

    wi2_aug, wj2_aug = prepare_glove_params(wi2, wj2, bi2, bj2)
    out2 = jax.block_until_ready(glove_forward(i_idx2, j_idx2, wi2_aug, wj2_aug))
    ref2 = glove_reference(i_idx2, j_idx2, wi2, wj2, bi2, bj2)
    assert out2.shape == (b2,), out2.shape
    assert jnp.allclose(out2, ref2, atol=1e-4, rtol=1e-4), (out2, ref2)

    print("KERNEL_OK")
</pallas_src>

<mosaic_0001>
module attributes {stable_mosaic.version = 11 : i64} {
  func.func @kernel(%arg0: i32, %arg1: i32, %arg2: memref<8xi32, #tpu.memory_space<smem>>, %arg3: memref<8xi32, #tpu.memory_space<smem>>, %arg4: memref<64x128xf32, #tpu.memory_space<any>>, %arg5: memref<64x128xf32, #tpu.memory_space<any>>, %arg6: memref<8x1xf32, #tpu.memory_space<vmem>>, %arg7: memref<2x8x128xf32, #tpu.memory_space<vmem>>, %arg8: memref<2x8x128xf32, #tpu.memory_space<vmem>>, %arg9: memref<2x2x!tpu.dma_semaphore, #tpu.memory_space<semaphore_mem>>) attributes {dimension_semantics = [#tpu.dimension_semantics<parallel>, #tpu.dimension_semantics<arbitrary>], iteration_bounds = array<i64: 1, 1>, scalar_prefetch = 2 : i64, scratch_operands = 3 : i64, tpu.core_type = #tpu.core_type<tc>, window_params = [{}, {}, {transform_indices = @transform_2, window_bounds = array<i64: 8, 1>}]} {
    %c2_i32 = arith.constant 2 : i32
    %c0_i32 = arith.constant 0 : i32
    %0 = arith.cmpi eq, %c2_i32, %c0_i32 : i32
    %c1_i32 = arith.constant 1 : i32
    %1 = arith.select %0, %c1_i32, %c2_i32 : i32
    %2 = arith.remsi %arg1, %1 : i32
    %c0_i32_0 = arith.constant 0 : i32
    %3 = arith.cmpi ne, %2, %c0_i32_0 : i32
    %c0_i32_1 = arith.constant 0 : i32
    %4 = arith.cmpi slt, %2, %c0_i32_1 : i32
    %c0_i32_2 = arith.constant 0 : i32
    %5 = arith.cmpi slt, %1, %c0_i32_2 : i32
    %6 = arith.xori %4, %5 : i1
    %7 = arith.andi %6, %3 : i1
    %8 = arith.addi %2, %1 : i32
    %9 = arith.select %7, %8, %2 : i32
    %c0_i32_3 = arith.constant 0 : i32
    %10 = arith.cmpi eq, %arg1, %c0_i32_3 : i32
    %11 = arith.extui %10 : i1 to i32
    %c0_i32_4 = arith.constant 0 : i32
    %12 = arith.cmpi ne, %11, %c0_i32_4 : i32
    scf.if %12 {
      %c1_i32_16 = arith.constant 1 : i32
      %28 = arith.muli %arg0, %c1_i32_16 : i32
      %29 = arith.addi %28, %arg1 : i32
      %c0_i32_17 = arith.constant 0 : i32
      %30 = arith.minsi %29, %c0_i32_17 : i32
      %c8_i32_18 = arith.constant 8 : i32
      %31 = arith.muli %30, %c8_i32_18 : i32
      %c0_i32_19 = arith.constant 0 : i32
      %c8_i32_20 = arith.constant 8 : i32
      %32 = arith.addi %c0_i32_19, %c8_i32_20 : i32
      %c1_i32_21 = arith.constant 1 : i32
      scf.for %arg10 = %c0_i32_19 to %32 step %c1_i32_21  : i32 {
        %33 = arith.addi %31, %arg10 : i32
        %34 = arith.index_cast %33 : i32 to index
        %35 = memref.load %arg2[%34] : memref<8xi32, #tpu.memory_space<smem>>
        %36 = arith.addi %31, %arg10 : i32
        %37 = arith.index_cast %36 : i32 to index
        %38 = memref.load %arg3[%37] : memref<8xi32, #tpu.memory_space<smem>>
        %c0_i32_23 = arith.constant 0 : i32
        %c0_i32_24 = arith.constant 0 : i32
        %39 = tpu.memref_slice %arg4[%35, %c0_i32_24] : memref<64x128xf32, #tpu.memory_space<any>> -> memref<1x128xf32, #tpu.memory_space<any>>
        %c0_i32_25 = arith.constant 0 : i32
        %40 = tpu.memref_slice %arg7[%9, %arg10, %c0_i32_25] : memref<2x8x128xf32, #tpu.memory_space<vmem>> -> memref<1x1x128xf32, #tpu.memory_space<vmem>>
        %41 = tpu.memref_squeeze %40 : memref<1x1x128xf32, #tpu.memory_space<vmem>> -> memref<1x128xf32, #tpu.memory_space<vmem>>
        %42 = tpu.memref_slice %arg9[%c0_i32_23, %9] : memref<2x2x!tpu.dma_semaphore, #tpu.memory_space<semaphore_mem>> -> memref<1x1x!tpu.dma_semaphore, #tpu.memory_space<semaphore_mem>>
        %43 = tpu.memref_squeeze %42 : memref<1x1x!tpu.dma_semaphore, #tpu.memory_space<semaphore_mem>> -> memref<!tpu.dma_semaphore, #tpu.memory_space<semaphore_mem>>
        tpu.enqueue_dma source(%39 : memref<1x128xf32, #tpu.memory_space<any>>) target(%41 : memref<1x128xf32, #tpu.memory_space<vmem>>) target_semaphore(%43 : memref<!tpu.dma_semaphore, #tpu.memory_space<semaphore_mem>>)
        %c1_i32_26 = arith.constant 1 : i32
        %c0_i32_27 = arith.constant 0 : i32
        %44 = tpu.memref_slice %arg5[%38, %c0_i32_27] : memref<64x128xf32, #tpu.memory_space<any>> -> memref<1x128xf32, #tpu.memory_space<any>>
        %c0_i32_28 = arith.constant 0 : i32
        %45 = tpu.memref_slice %arg8[%9, %arg10, %c0_i32_28] : memref<2x8x128xf32, #tpu.memory_space<vmem>> -> memref<1x1x128xf32, #tpu.memory_space<vmem>>
        %46 = tpu.memref_squeeze %45 : memref<1x1x128xf32, #tpu.memory_space<vmem>> -> memref<1x128xf32, #tpu.memory_space<vmem>>
        %47 = tpu.memref_slice %arg9[%c1_i32_26, %9] : memref<2x2x!tpu.dma_semaphore, #tpu.memory_space<semaphore_mem>> -> memref<1x1x!tpu.dma_semaphore, #tpu.memory_space<semaphore_mem>>
        %48 = tpu.memref_squeeze %47 : memref<1x1x!tpu.dma_semaphore, #tpu.memory_space<semaphore_mem>> -> memref<!tpu.dma_semaphore, #tpu.memory_space<semaphore_mem>>
        tpu.enqueue_dma source(%44 : memref<1x128xf32, #tpu.memory_space<any>>) target(%46 : memref<1x128xf32, #tpu.memory_space<vmem>>) target_semaphore(%48 : memref<!tpu.dma_semaphore, #tpu.memory_space<semaphore_mem>>)
      }
      %c8_i32_22 = arith.constant 8 : i32
    } else {
    }
    %c1_i32_5 = arith.constant 1 : i32
    %13 = arith.addi %arg1, %c1_i32_5 : i32
    %c1_i32_6 = arith.constant 1 : i32
    %14 = arith.cmpi slt, %13, %c1_i32_6 : i32
    %15 = arith.extui %14 : i1 to i32
    %c0_i32_7 = arith.constant 0 : i32
    %16 = arith.cmpi ne, %15, %c0_i32_7 : i32
    scf.if %16 {
      %c1_i32_16 = arith.constant 1 : i32
      %28 = arith.muli %arg0, %c1_i32_16 : i32
      %29 = arith.addi %28, %arg1 : i32
      %c1_i32_17 = arith.constant 1 : i32
      %30 = arith.addi %29, %c1_i32_17 : i32
      %c1_i32_18 = arith.constant 1 : i32
      %31 = arith.subi %c1_i32_18, %9 : i32
      %c0_i32_19 = arith.constant 0 : i32
      %32 = arith.minsi %30, %c0_i32_19 : i32
      %c8_i32_20 = arith.constant 8 : i32
      %33 = arith.muli %32, %c8_i32_20 : i32
      %c0_i32_21 = arith.constant 0 : i32
      %c8_i32_22 = arith.constant 8 : i32
      %34 = arith.addi %c0_i32_21, %c8_i32_22 : i32
      %c1_i32_23 = arith.constant 1 : i32
      scf.for %arg10 = %c0_i32_21 to %34 step %c1_i32_23  : i32 {
        %35 = arith.addi %33, %arg10 : i32
        %36 = arith.index_cast %35 : i32 to index
        %37 = memref.load %arg2[%36] : memref<8xi32, #tpu.memory_space<smem>>
        %38 = arith.addi %33, %arg10 : i32
        %39 = arith.index_cast %38 : i32 to index
        %40 = memref.load %arg3[%39] : memref<8xi32, #tpu.memory_space<smem>>
        %c0_i32_25 = arith.constant 0 : i32
        %c0_i32_26 = arith.constant 0 : i32
        %41 = tpu.memref_slice %arg4[%37, %c0_i32_26] : memref<64x128xf32, #tpu.memory_space<any>> -> memref<1x128xf32, #tpu.memory_space<any>>
        %c0_i32_27 = arith.constant 0 : i32
        %42 = tpu.memref_slice %arg7[%31, %arg10, %c0_i32_27] : memref<2x8x128xf32, #tpu.memory_space<vmem>> -> memref<1x1x128xf32, #tpu.memory_space<vmem>>
        %43 = tpu.memref_squeeze %42 : memref<1x1x128xf32, #tpu.memory_space<vmem>> -> memref<1x128xf32, #tpu.memory_space<vmem>>
        %44 = tpu.memref_slice %arg9[%c0_i32_25, %31] : memref<2x2x!tpu.dma_semaphore, #tpu.memory_space<semaphore_mem>> -> memref<1x1x!tpu.dma_semaphore, #tpu.memory_space<semaphore_mem>>
        %45 = tpu.memref_squeeze %44 : memref<1x1x!tpu.dma_semaphore, #tpu.memory_space<semaphore_mem>> -> memref<!tpu.dma_semaphore, #tpu.memory_space<semaphore_mem>>
        tpu.enqueue_dma source(%41 : memref<1x128xf32, #tpu.memory_space<any>>) target(%43 : memref<1x128xf32, #tpu.memory_space<vmem>>) target_semaphore(%45 : memref<!tpu.dma_semaphore, #tpu.memory_space<semaphore_mem>>)
        %c1_i32_28 = arith.constant 1 : i32
        %c0_i32_29 = arith.constant 0 : i32
        %46 = tpu.memref_slice %arg5[%40, %c0_i32_29] : memref<64x128xf32, #tpu.memory_space<any>> -> memref<1x128xf32, #tpu.memory_space<any>>
        %c0_i32_30 = arith.constant 0 : i32
        %47 = tpu.memref_slice %arg8[%31, %arg10, %c0_i32_30] : memref<2x8x128xf32, #tpu.memory_space<vmem>> -> memref<1x1x128xf32, #tpu.memory_space<vmem>>
        %48 = tpu.memref_squeeze %47 : memref<1x1x128xf32, #tpu.memory_space<vmem>> -> memref<1x128xf32, #tpu.memory_space<vmem>>
        %49 = tpu.memref_slice %arg9[%c1_i32_28, %31] : memref<2x2x!tpu.dma_semaphore, #tpu.memory_space<semaphore_mem>> -> memref<1x1x!tpu.dma_semaphore, #tpu.memory_space<semaphore_mem>>
        %50 = tpu.memref_squeeze %49 : memref<1x1x!tpu.dma_semaphore, #tpu.memory_space<semaphore_mem>> -> memref<!tpu.dma_semaphore, #tpu.memory_space<semaphore_mem>>
        tpu.enqueue_dma source(%46 : memref<1x128xf32, #tpu.memory_space<any>>) target(%48 : memref<1x128xf32, #tpu.memory_space<vmem>>) target_semaphore(%50 : memref<!tpu.dma_semaphore, #tpu.memory_space<semaphore_mem>>)
      }
      %c8_i32_24 = arith.constant 8 : i32
    } else {
    }
    %c0_i32_8 = arith.constant 0 : i32
    %c8_i32 = arith.constant 8 : i32
    %17 = arith.addi %c0_i32_8, %c8_i32 : i32
    %c1_i32_9 = arith.constant 1 : i32
    scf.for %arg10 = %c0_i32_8 to %17 step %c1_i32_9  : i32 {
      %c0_i32_16 = arith.constant 0 : i32
      %c0_i32_17 = arith.constant 0 : i32
      %c0_i32_18 = arith.constant 0 : i32
      %28 = tpu.memref_slice %arg4[%c0_i32_17, %c0_i32_18] : memref<64x128xf32, #tpu.memory_space<any>> -> memref<1x128xf32, #tpu.memory_space<any>>
      %c0_i32_19 = arith.constant 0 : i32
      %29 = tpu.memref_slice %arg7[%9, %arg10, %c0_i32_19] : memref<2x8x128xf32, #tpu.memory_space<vmem>> -> memref<1x1x128xf32, #tpu.memory_space<vmem>>
      %30 = tpu.memref_squeeze %29 : memref<1x1x128xf32, #tpu.memory_space<vmem>> -> memref<1x128xf32, #tpu.memory_space<vmem>>
      %31 = tpu.memref_slice %arg9[%c0_i32_16, %9] : memref<2x2x!tpu.dma_semaphore, #tpu.memory_space<semaphore_mem>> -> memref<1x1x!tpu.dma_semaphore, #tpu.memory_space<semaphore_mem>>
      %32 = tpu.memref_squeeze %31 : memref<1x1x!tpu.dma_semaphore, #tpu.memory_space<semaphore_mem>> -> memref<!tpu.dma_semaphore, #tpu.memory_space<semaphore_mem>>
      tpu.wait_dma2 semaphore(%32 : memref<!tpu.dma_semaphore, #tpu.memory_space<semaphore_mem>>) src(%28 : memref<1x128xf32, #tpu.memory_space<any>>) dst(%30 : memref<1x128xf32, #tpu.memory_space<vmem>>)
      %c1_i32_20 = arith.constant 1 : i32
      %c0_i32_21 = arith.constant 0 : i32
      %c0_i32_22 = arith.constant 0 : i32
      %33 = tpu.memref_slice %arg5[%c0_i32_21, %c0_i32_22] : memref<64x128xf32, #tpu.memory_space<any>> -> memref<1x128xf32, #tpu.memory_space<any>>
      %c0_i32_23 = arith.constant 0 : i32
      %34 = tpu.memref_slice %arg8[%9, %arg10, %c0_i32_23] : memref<2x8x128xf32, #tpu.memory_space<vmem>> -> memref<1x1x128xf32, #tpu.memory_space<vmem>>
      %35 = tpu.memref_squeeze %34 : memref<1x1x128xf32, #tpu.memory_space<vmem>> -> memref<1x128xf32, #tpu.memory_space<vmem>>
      %36 = tpu.memref_slice %arg9[%c1_i32_20, %9] : memref<2x2x!tpu.dma_semaphore, #tpu.memory_space<semaphore_mem>> -> memref<1x1x!tpu.dma_semaphore, #tpu.memory_space<semaphore_mem>>
      %37 = tpu.memref_squeeze %36 : memref<1x1x!tpu.dma_semaphore, #tpu.memory_space<semaphore_mem>> -> memref<!tpu.dma_semaphore, #tpu.memory_space<semaphore_mem>>
      tpu.wait_dma2 semaphore(%37 : memref<!tpu.dma_semaphore, #tpu.memory_space<semaphore_mem>>) src(%33 : memref<1x128xf32, #tpu.memory_space<any>>) dst(%35 : memref<1x128xf32, #tpu.memory_space<vmem>>)
    }
    %c8_i32_10 = arith.constant 8 : i32
    %18 = arith.index_cast %9 : i32 to index
    %c0 = arith.constant 0 : index
    %c0_11 = arith.constant 0 : index
    %19 = vector.load %arg7[%18, %c0, %c0_11] : memref<2x8x128xf32, #tpu.memory_space<vmem>>, vector<1x8x128xf32>
    %20 = vector.shape_cast %19 : vector<1x8x128xf32> to vector<8x128xf32>
    %21 = arith.index_cast %9 : i32 to index
    %c0_12 = arith.constant 0 : index
    %c0_13 = arith.constant 0 : index
    %22 = vector.load %arg8[%21, %c0_12, %c0_13] : memref<2x8x128xf32, #tpu.memory_space<vmem>>, vector<1x8x128xf32>
    %23 = vector.shape_cast %22 : vector<1x8x128xf32> to vector<8x128xf32>
    %24 = arith.mulf %20, %23 : vector<8x128xf32>
    %cst = arith.constant dense<0.000000e+00> : vector<8xf32>
    %25 = vector.multi_reduction <add>, %24, %cst [1] : vector<8x128xf32> to vector<8xf32>
    %26 = vector.shape_cast %25 : vector<8xf32> to vector<8x1xf32>
    %c0_14 = arith.constant 0 : index
    %c0_15 = arith.constant 0 : index
    %27 = vector.load %arg6[%c0_14, %c0_15] : memref<8x1xf32, #tpu.memory_space<vmem>>, vector<8x1xf32>
    tpu.vector_store %arg6[%c0_14, %c0_15], %26 {strides = array<i32>} : memref<8x1xf32, #tpu.memory_space<vmem>>, vector<8x1xf32>,
    return
  }
  func.func @transform_2(%arg0: i32, %arg1: i32, %arg2: memref<8xi32, #tpu.memory_space<smem>>, %arg3: memref<8xi32, #tpu.memory_space<smem>>) -> (i32, i32) {
    %c1_i32 = arith.constant 1 : i32
    %0 = arith.muli %arg0, %c1_i32 : i32
    %1 = arith.addi %0, %arg1 : i32
    %c0_i32 = arith.constant 0 : i32
    %c0_i32_0 = arith.constant 0 : i32
    return %1, %c0_i32 : i32, i32
  }
}

</mosaic_0001>

<bundles_post_ra>
// kernel: tpu_custom_call.1
= control target key start
LH: loop header
LB: loop body
LE: loop exit
PB: predicated region body
PF: predicated region fallthrough
CT: control target
= control target key end

     0   :  { %s379_s15 = smov [#allocation6]   ;;  %s456_s0 = inlined_call_operand.hbm [shape: s32[8], index: 0, kind: input, shape index: {}]   ;;  %s457_s2 = inlined_call_operand.hbm [shape: f32[64,128], index: 2, kind: input, shape index: {}]   ;;  %s458_s3 = inlined_call_operand.hbm [shape: f32[64,128], index: 3, kind: input, shape index: {}]   ;;  %s459_s4 = inlined_call_operand.vmem [shape: f32[8,1], index: 4, kind: output, shape index: {}]   ;;  %s460_s1 = inlined_call_operand.vmem [shape: s32[8], index: 1, kind: input, shape index: {}]  }
   0x1   :  { %10 = dma.hbm_to_smem %s456_s0, 16, %s379_s15, [#allocation5] }
   0x2   :  { %s11_s20 = sshll.u32 %s460_s1, 4  ;;  %s12_s20 = int_to_ptr.vmem [resolvable:$true] %s11_s20 }
   0x3   :  { %s301_s21 = scalar_lea.vmem %s12_s20, 16  ;;  %p306_p1 = scmp.lt.s32.totalorder %s12_s20, %s12_s20 }
   0x4   :  { %p302_p0 = scmp.ne.s32.totalorder %s12_s20, %s301_s21  ;;  %p307_p2 = scmp.lt.s32.totalorder %s301_s21, %s301_s21 }
   0x6   :  { %p308_p3 = por %p307_p2, %p306_p1 }
   0x8   :  { %p309_p4 = pnand %p308_p3, %p302_p0 }
   0xa   :  { %312 = shalt.err (!%p309_p4)  }
   0xb   :  { %s380_s22 = smov [#allocation7]  }
   0xc   :  { %14 = dma.vmem_to_smem %s12_s20, 16, %s380_s22, [#allocation5] }
   0xd   :  { %365 = dma.done.wait [#allocation5], 32 }
   0xe   :  { %366 = vsyncadd [#allocation5], 4294967264 }
   0xf   :  { %16 = sfence }
  0x10   :  { %s414_s23 = smov 0  }
  0x11 LB: > { %s51_s0 = sld [smem:[#allocation6 + %s373_s23]]  ;;  %s57_s24 = scalar_lea.vmem [#allocation2], %s373_s23  ;;  %s373_s23 = sphi %s414_s23, %s49_s23  }
  0x12   : > { %s421_s1 = sld [smem:[#allocation7 + %s373_s23]]  ;;  %s66_s25 = sshll.u32 %s57_s24, 4  ;;  %s67_s25 = int_to_ptr.vmem [resolvable:$true] %s66_s25 }
  0x13   : > { %s72_s26 = scalar_lea.vmem [#allocation3], %s373_s23  ;;  %s315_s10 = scalar_lea.hbm %s457_s2, 1024 }
  0x14   : > { %s82_s27 = sshll.u32 %s72_s26, 4  ;;  %s425_s27 = int_to_ptr.vmem [resolvable:$true] %s82_s27 }
  0x17   : > { %s261_s28 = sshll.u32 %s51_s0, 4 }
  0x18   : > { %s54_s5 = scalar_lea.hbm %s457_s2, %s261_s28  ;;  %s262_s6 = sshll.u32 %s421_s1, 4 }
  0x19   : > { %s313_s7 = scalar_lea.hbm %s54_s5, 16  ;;  %p316_p6 = scmp.lt.s32.totalorder %s54_s5, %s457_s2 }
  0x1a   : > { %p314_p5 = scmp.ne.s32.totalorder %s54_s5, %s313_s7  ;;  %p317_p7 = scmp.lt.s32.totalorder %s315_s10, %s313_s7 }
  0x1c   : > { %p318_p8 = por %p317_p7, %p316_p6 }
  0x1e   : > { %p319_p9 = pnand %p318_p8, %p314_p5 }
  0x20   : > { %322 = shalt.err (!%p319_p9)  }
  0x21   : > { %s323_s13 = scalar_lea.vmem %s67_s25, 16  ;;  %s381_s14 = smov [#allocation2]  }
  0x22   : > { %p324_p10 = scmp.ne.s32.totalorder %s67_s25, %s323_s13  ;;  %s325_s15 = sshll.u32 %s381_s14, 4  ;;  %s326_s15 = int_to_ptr.vmem [resolvable:$false] %s325_s15 }
  0x23   : > { %s327_s16 = scalar_lea.vmem %s326_s15, 256  ;;  %p328_p11 = scmp.lt.s32.totalorder %s67_s25, %s326_s15 }
  0x24   : > { %p329_p12 = scmp.lt.s32.totalorder %s327_s16, %s323_s13 }
  0x26   : > { %p330_p13 = por %p329_p12, %p328_p11 }
  0x28   : > { %p331_p0 = pnand %p330_p13, %p324_p10 }
  0x2a   : > { %334 = shalt.err (!%p331_p0)  }
  0x2b   : > { %69 = dma.hbm_to_vmem [thread:$0]  %s54_s5, 16, %s67_s25, [#allocation4] }
  0x2c   : > { %s71_s19 = scalar_lea.hbm %s458_s3, %s262_s6  ;;  %s337_s0 = scalar_lea.hbm %s458_s3, 1024 }
  0x2d   : > { %s335_s20 = scalar_lea.hbm %s71_s19, 16  ;;  %p338_p2 = scmp.lt.s32.totalorder %s71_s19, %s458_s3 }
  0x2e   : > { %p336_p1 = scmp.ne.s32.totalorder %s71_s19, %s335_s20  ;;  %p339_p3 = scmp.lt.s32.totalorder %s337_s0, %s335_s20 }
  0x30   : > { %p340_p4 = por %p339_p3, %p338_p2 }
  0x32   : > { %p341_p5 = pnand %p340_p4, %p336_p1 }
  0x34   : > { %344 = shalt.err (!%p341_p5)  }
  0x35   : > { %s345_s25 = scalar_lea.vmem %s425_s27, 16  ;;  %s382_s26 = smov [#allocation3]  }
  0x36   : > { %p346_p6 = scmp.ne.s32.totalorder %s425_s27, %s345_s25  ;;  %s347_s28 = sshll.u32 %s382_s26, 4  ;;  %s348_s28 = int_to_ptr.vmem [resolvable:$false] %s347_s28 }
  0x37   : > { %s349_s29 = scalar_lea.vmem %s348_s28, 256  ;;  %p350_p7 = scmp.lt.s32.totalorder %s425_s27, %s348_s28 }
  0x38   : > { %p351_p8 = scmp.lt.s32.totalorder %s349_s29, %s345_s25 }
  0x3a   : > { %p352_p9 = por %p351_p8, %p350_p7 }
  0x3c   : > { %p353_p10 = pnand %p352_p9, %p346_p6 }
  0x3e   : > { %356 = shalt.err (!%p353_p10)  }
  0x3f   : > { %85 = dma.hbm_to_vmem [thread:$0]  %s71_s19, 16, %s425_s27, [#allocation4 + $0x2] }
  0x40   : > { %s49_s23 = sadd.s32 1, %s373_s23  }
  0x41   : > { %p46_p11 = scmp.ge.s32.totalorder %s49_s23, 8  }
  0x42   :  { %s375_s30 = smov (%p46_p11), 0  }
  0x43   :  { %48 = sbr.rel (!%p46_p11) target bundleno = 17 (0x11), region = 88 }
  0x48 LB: > { %367 = dma.done.wait [#allocation4], 16  ;;  %s377_s30 = sphi %s375_s30, %s144_s30  }
  0x49   : > { %368 = vsyncadd [#allocation4], 4294967280 }
  0x4a   : > { %369 = dma.done.wait [#allocation4 + $0x2], 16 }
  0x4b   : > { %370 = vsyncadd [#allocation4 + $0x2], 4294967280  ;;  %s144_s30 = sadd.s32 1, %s377_s30  }
  0x4c   : > { %p141_p12 = scmp.ge.s32.totalorder %s144_s30, 8  }
  0x4d   :  { %v155_v0 = vld [vmem:[#allocation2] sm:$0xff] (%p141_p12)  ;;  %v157_v1 = vld [vmem:[#allocation3] sm:$0xff] (%p141_p12)  ;;  %vm161_vm0 = vcmask (%p141_p12), 7168  }
  0x4e   :  { %143 = sbr.rel (!%p141_p12) target bundleno = 72 (0x48), region = 110  ;;  %v158_v2 = vmul.f32 (%p141_p12), %v157_v1, %v155_v0 }
  0x50   :  { %159 = vadd.xlane.f32.xlu0 (%p141_p12), %v158_v2 }
  0xd9   :  { %v160_v3 = vpop.xlane.xlu0 %159 }
  0xda   :  { %162 = vst.msk [vmem:[%s459_s4] sm:$0xff] %vm161_vm0, %v160_v3 }
  0xdb   :  { %178 = vsyncmov [#allocation4] }
  0xde   :  { %s179_s2 = vpop.sfrf %178 }
  0xdf   :  { %p267_p13 = scmp.ne.s32.totalorder %s179_s2, 0 }
  0xe1   :  { %183 = shalt.err (%p267_p13)  }
  0xe2   :  { %185 = vsyncmov [#allocation4 + $0x1] }
  0xe5   :  { %s186_s3 = vpop.sfrf %185 }
  0xe6   :  { %p268_p0 = scmp.ne.s32.totalorder %s186_s3, 0 }
  0xe8   :  { %190 = shalt.err (%p268_p0)  }
  0xe9   :  { %192 = vsyncmov [#allocation4 + $0x2] }
  0xec   :  { %s193_s5 = vpop.sfrf %192 }
  0xed   :  { %p269_p1 = scmp.ne.s32.totalorder %s193_s5, 0 }
  0xef   :  { %197 = shalt.err (%p269_p1)  }
  0xf0   :  { %199 = vsyncmov [#allocation4 + $0x3] }
  0xf3   :  { %s200_s6 = vpop.sfrf %199 }
  0xf4   :  { %p270_p2 = scmp.ne.s32.totalorder %s200_s6, 0 }
  0xf6   :  { %204 = shalt.err (%p270_p2)  }

</bundles_post_ra>
